<compile_context>
chip_gen: v7x
topology: tpu7x:2x2x1
jax: 0.10.0
libtpu: 0.0.40
codegen_flags: <defaults>
</compile_context>

<pallas_src>
import math

import jax
import jax.numpy as jnp
from jax.experimental import pallas as pl
from jax.experimental.pallas import tpu as pltpu

_SQRT_2_OVER_PI = math.sqrt(2.0 / math.pi)


def _round_up(a, b):
    return (a + b - 1) // b * b


def _cdiv(a, b):
    return (a + b - 1) // b


def _gelu_tanh(x):
    # Matches torch.nn.functional.gelu(x, approximate='tanh')
    return 0.5 * x * (1.0 + jnp.tanh(_SQRT_2_OVER_PI * (x + 0.044715 * x * x * x)))


# ----------------------------------------------------------------------------
# Kernel
# ----------------------------------------------------------------------------
def _ffn_kernel(x_ref, wug_ref, bug_ref, wd_ref, bd_ref, out_ref, acc_ref):
    # x_ref:   (TM, d_model)           token tile (compute dtype)
    # wug_ref: (d_model, 2*TF)         fused [W_up | W_gate] slab, (in,out) layout
    # bug_ref: (1, 2*TF)               fused [b_up | b_gate] slab (f32)
    # wd_ref:  (TF, d_model)           down-proj weight slab, (in,out) layout
    # bd_ref:  (1, d_model)            down-proj bias (f32)
    # out_ref: (TM, d_model)           output tile (resident across the f axis)
    # acc_ref: (TM, d_model) f32       accumulator scratch
    f = pl.program_id(1)

    @pl.when(f == 0)
    def _():
        acc_ref[...] = jnp.zeros_like(acc_ref)

    x = x_ref[...]
    # Single fused matmul for up+gate projections: one DMA stream, one MXU op.
    ug = jnp.dot(x, wug_ref[...], preferred_element_type=jnp.float32) + bug_ref[...]
    half = ug.shape[-1] // 2          # static; slab is [up(TF) | gate(TF)]
    up = ug[:, :half]
    gate = ug[:, half:]
    h = up * _gelu_tanh(gate)         # (TM, TF), f32

    acc_ref[...] += jnp.dot(h.astype(wd_ref.dtype), wd_ref[...],
                            preferred_element_type=jnp.float32)

    @pl.when(f == pl.num_programs(1) - 1)
    def _():
        out_ref[...] = (acc_ref[...] + bd_ref[...]).astype(out_ref.dtype)


# ----------------------------------------------------------------------------
# Generation-aware VMEM budget & tile selection
# ----------------------------------------------------------------------------
def _physical_vmem_bytes():
    try:
        info = pltpu.get_tpu_info()
        cap = int(getattr(info, "vmem_capacity_bytes", 0) or 0)
        if cap > 0:
            return cap
    except Exception:
        pass
    try:
        kind = jax.devices()[0].device_kind.lower()
        if "v7" in kind:
            return 64 * 1024 * 1024
    except Exception:
        pass
    return 128 * 1024 * 1024  # v5e / v6e


def _vmem_budget_bytes():
    phys = _physical_vmem_bytes()
    try:
        # v7x has 64 MiB per TensorCore; never budget against a chip total.
        if "v7" in jax.devices()[0].device_kind.lower():
            phys = min(phys, 64 * 1024 * 1024)
    except Exception:
        pass
    # ~20% headroom for compiler-internal scratch; cap at ~100 MiB on 128 MiB parts.
    return min(int(0.8 * phys), 100 * 1024 * 1024)


def _estimate_vmem_bytes(tm, tf, d_model, w_isz, x_isz, o_isz):
    dbl = 2  # Pallas double-buffers each pipelined operand
    b = 0
    b += dbl * tm * d_model * x_isz            # x tile
    b += dbl * d_model * (2 * tf) * w_isz      # fused up|gate weight slab
    b += dbl * (2 * tf) * 4                    # fused bias (f32)
    b += dbl * tf * d_model * w_isz            # down-proj weight slab
    b += dbl * d_model * 4                     # down bias (f32)
    b += dbl * tm * d_model * o_isz            # output tile
    b += tm * d_model * 4                      # f32 accumulator scratch
    return b
    # TODO(synk): on v7x, pipeline_mode=pl.Buffered(1) on the x/out blocks
    # (constant across the f axis) would free one redundant buffer each.


def _select_tiles(d_model, d_int, w_isz, x_isz, o_isz, budget):
    di_full = _round_up(max(d_int, 1), 128)
    cap = int(0.9 * budget)

    combos = []
    # Prefer keeping ALL weights resident in VMEM (read from HBM once in total
    # rather than once per token tile), but only with a large token tile.
    for tm in (512, 384, 256):
        combos.append((tm, di_full))
    # Otherwise stream d_intermediate in large slabs; the token tile TM is the
    # primary arithmetic-intensity knob (~2*TM/itemsize flop/byte).
    for tf in (1024, 512, 256, 128):
        if tf >= di_full:
            continue
        for tm in (512, 384, 256, 128, 64, 32, 16, 8):
            combos.append((tm, tf))
    combos.append((8, 128))  # last resort

    for tm, tf in combos:
        if _estimate_vmem_bytes(tm, tf, d_model, w_isz, x_isz, o_isz) <= cap:
            return tm, tf
    return 8, 128


# ----------------------------------------------------------------------------
# One-time parameter preparation (do NOT call per forward pass)
# ----------------------------------------------------------------------------
def prepare_ffn_params(w_up, b_up, w_gate, b_gate, w_down, b_down,
                       *, compute_dtype=jnp.bfloat16):
    """Transpose / fuse / pad / cast the PyTorch-layout weights once.

    w_up, w_gate: (d_intermediate, d_model);  w_down: (d_model, d_intermediate)
    """
    d_intermediate, d_model = w_up.shape
    assert w_gate.shape == (d_intermediate, d_model)
    assert w_down.shape == (d_model, d_intermediate)

    w_isz = jnp.dtype(compute_dtype).itemsize
    vmem_limit = _vmem_budget_bytes()
    tm_target, tf = _select_tiles(d_model, d_intermediate,
                                  w_isz=w_isz, x_isz=w_isz, o_isz=4,
                                  budget=vmem_limit)

    # Rebalance tf so padding of d_intermediate is minimal.
    di_full = _round_up(max(d_intermediate, 1), 128)
    nf = _cdiv(di_full, tf)
    tf = _round_up(_cdiv(di_full, nf), 128)
    di_pad = nf * tf
    pad_i = di_pad - d_intermediate

    # (in, out) layouts, zero-padded along d_intermediate (padded columns have
    # zero weight and zero bias -> contribute exactly 0 to the output).
    wu_t = jnp.pad(jnp.transpose(w_up), ((0, 0), (0, pad_i))).astype(compute_dtype)
    wg_t = jnp.pad(jnp.transpose(w_gate), ((0, 0), (0, pad_i))).astype(compute_dtype)
    # Interleave per f-tile so one (d_model, 2*tf) block is [up slab | gate slab].
    wug = jnp.concatenate(
        [wu_t.reshape(d_model, nf, 1, tf), wg_t.reshape(d_model, nf, 1, tf)],
        axis=2).reshape(d_model, 2 * di_pad)

    bu = jnp.pad(b_up, (0, pad_i)).astype(jnp.float32)
    bg = jnp.pad(b_gate, (0, pad_i)).astype(jnp.float32)
    bug = jnp.concatenate([bu.reshape(nf, 1, tf), bg.reshape(nf, 1, tf)],
                          axis=1).reshape(1, 2 * di_pad)

    wd = jnp.pad(jnp.transpose(w_down), ((0, pad_i), (0, 0))).astype(compute_dtype)
    bd = b_down.reshape(1, d_model).astype(jnp.float32)

    return dict(wug=wug, bug=bug, wd=wd, bd=bd,
                d_model=d_model, d_intermediate=d_intermediate,
                di_pad=di_pad, tf=tf, tm_target=tm_target,
                vmem_limit_bytes=vmem_limit)


# ----------------------------------------------------------------------------
# Forward pass
# ----------------------------------------------------------------------------
def feed_forward_network(x, params):
    """Pallas equivalent of FeedForwardNetwork.forward (dropout in eval mode)."""
    d_model = params["d_model"]
    if x.shape[-1] != d_model:
        raise ValueError(f"x last dim {x.shape[-1]} != d_model {d_model}")

    tf = params["tf"]
    di_pad = params["di_pad"]
    nf = di_pad // tf
    wug, bug, wd, bd = params["wug"], params["bug"], params["wd"], params["bd"]
    compute_dtype = wug.dtype
    out_dtype = x.dtype

    orig_shape = x.shape
    n_tokens = 1
    for s in orig_shape[:-1]:
        n_tokens *= int(s)
    n_tokens = max(n_tokens, 1)

    x2 = x.reshape(n_tokens, d_model).astype(compute_dtype)

    # Balanced token tiling (padded to a multiple of 8 sublanes); avoids
    # VMEM-blowing fallbacks on ragged shapes and keeps the pipeline alive.
    # (On v7x, >=2 token tiles also lets megacore split the "parallel" axis.)
    n_pad8 = _round_up(n_tokens, 8)
    n_tiles = max(1, _cdiv(n_pad8, params["tm_target"]))
    tm = _round_up(_cdiv(n_pad8, n_tiles), 8)
    n_pad = tm * n_tiles
    if n_pad != n_tokens:
        x2 = jnp.pad(x2, ((0, n_pad - n_tokens), (0, 0)))

    # Cost estimate: weights are streamed once per token tile unless the f
    # axis collapsed to 1 (weights resident in VMEM).
    itemsize = jnp.dtype(compute_dtype).itemsize
    weight_bytes = (wug.size + wd.size) * itemsize + (bug.size + bd.size) * 4
    stream_factor = n_tiles if nf > 1 else 1
    bytes_accessed = int(x2.size * itemsize
                         + n_pad * d_model * jnp.dtype(out_dtype).itemsize
                         + stream_factor * weight_bytes)
    flops = int(6 * n_pad * d_model * di_pad + 8 * n_pad * di_pad)

    out = pl.pallas_call(
        _ffn_kernel,
        out_shape=jax.ShapeDtypeStruct((n_pad, d_model), out_dtype),
        grid_spec=pltpu.PrefetchScalarGridSpec(
            num_scalar_prefetch=0,
            grid=(n_tiles, nf),
            in_specs=[
                pl.BlockSpec((tm, d_model),     lambda m, f: (m, 0)),  # x tile
                pl.BlockSpec((d_model, 2 * tf), lambda m, f: (0, f)),  # [W_up|W_gate]
                pl.BlockSpec((1, 2 * tf),       lambda m, f: (0, f)),  # [b_up|b_gate]
                pl.BlockSpec((tf, d_model),     lambda m, f: (f, 0)),  # W_down slab
                pl.BlockSpec((1, d_model),      lambda m, f: (0, 0)),  # b_down
            ],
            out_specs=pl.BlockSpec((tm, d_model), lambda m, f: (m, 0)),
            scratch_shapes=[pltpu.VMEM((tm, d_model), jnp.float32)],
        ),
        compiler_params=pltpu.CompilerParams(
            dimension_semantics=("parallel", "arbitrary"),
            vmem_limit_bytes=int(params["vmem_limit_bytes"]),
        ),
        cost_estimate=pl.CostEstimate(
            flops=flops,
            transcendentals=int(n_pad * di_pad),
            bytes_accessed=bytes_accessed,
        ),
    )(x2, wug, bug, wd, bd)

    if n_pad != n_tokens:
        out = out[:n_tokens]
    return out.reshape(orig_shape)


def _reference_ffn(x, w_up, b_up, w_gate, b_gate, w_down, b_down):
    up = x @ w_up.T + b_up
    gate = _gelu_tanh(x @ w_gate.T + b_gate)
    fuse = up * gate
    return fuse @ w_down.T + b_down


if __name__ == "__main__":
    batch, seq = 2, 8
    d_model = 128
    d_intermediate = 256

    key = jax.random.PRNGKey(0)
    kx, ku, kbu, kg, kbg, kd, kbd = jax.random.split(key, 7)

    # nn.Linear default init: U(-1/sqrt(fan_in), 1/sqrt(fan_in))
    lim_in = 1.0 / math.sqrt(d_model)
    lim_mid = 1.0 / math.sqrt(d_intermediate)

    x = jax.random.normal(kx, (batch, seq, d_model), dtype=jnp.float32)
    w_up = jax.random.uniform(ku, (d_intermediate, d_model), jnp.float32,
                              -lim_in, lim_in)
    b_up = jax.random.uniform(kbu, (d_intermediate,), jnp.float32,
                              -lim_in, lim_in)
    w_gate = jax.random.uniform(kg, (d_intermediate, d_model), jnp.float32,
                                -lim_in, lim_in)
    b_gate = jax.random.uniform(kbg, (d_intermediate,), jnp.float32,
                                -lim_in, lim_in)
    w_down = jax.random.uniform(kd, (d_model, d_intermediate), jnp.float32,
                                -lim_mid, lim_mid)
    b_down = jax.random.uniform(kbd, (d_model,), jnp.float32,
                                -lim_mid, lim_mid)

    ref = _reference_ffn(x, w_up, b_up, w_gate, b_gate, w_down, b_down)

    # f32 compute path (tight tolerance).
    params_f32 = prepare_ffn_params(w_up, b_up, w_gate, b_gate, w_down, b_down,
                                    compute_dtype=jnp.float32)
    out_f32 = jax.block_until_ready(feed_forward_network(x, params_f32))
    assert out_f32.shape == x.shape
    assert jnp.allclose(out_f32, ref, atol=1e-2, rtol=1e-2), (
        float(jnp.max(jnp.abs(out_f32 - ref))))

    # bf16 weights/activations (recommended perf config), f32 accumulation.
    params_bf16 = prepare_ffn_params(w_up, b_up, w_gate, b_gate, w_down, b_down,
                                     compute_dtype=jnp.bfloat16)
    out_bf16 = jax.block_until_ready(feed_forward_network(x, params_bf16))
    assert out_bf16.shape == x.shape
    err = float(jnp.max(jnp.abs(out_bf16.astype(jnp.float32) - ref)))
    assert jnp.allclose(out_bf16.astype(jnp.float32), ref, atol=3e-2, rtol=3e-2), err

    print("KERNEL_OK")
</pallas_src>

<mosaic_0001>
module attributes {stable_mosaic.version = 11 : i64} {
  func.func @_ffn_kernel(%arg0: i32, %arg1: i32, %arg2: memref<16x128xf32, #tpu.memory_space<vmem>>, %arg3: memref<128x512xf32, #tpu.memory_space<vmem>>, %arg4: memref<1x512xf32, #tpu.memory_space<vmem>>, %arg5: memref<256x128xf32, #tpu.memory_space<vmem>>, %arg6: memref<1x128xf32, #tpu.memory_space<vmem>>, %arg7: memref<16x128xf32, #tpu.memory_space<vmem>>, %arg8: memref<16x128xf32, #tpu.memory_space<vmem>>) attributes {dimension_semantics = [#tpu.dimension_semantics<parallel>, #tpu.dimension_semantics<arbitrary>], iteration_bounds = array<i64: 1, 1>, scalar_prefetch = 0 : i64, scratch_operands = 1 : i64, tpu.core_type = #tpu.core_type<tc>, window_params = [{transform_indices = @transform_0, window_bounds = array<i64: 16, 128>}, {transform_indices = @transform_1, window_bounds = array<i64: 128, 512>}, {transform_indices = @transform_2, window_bounds = array<i64: 1, 512>}, {transform_indices = @transform_3, window_bounds = array<i64: 256, 128>}, {pipeline_mode = #tpu.pipeline_mode<synchronous>, transform_indices = @transform_4, window_bounds = array<i64: 1, 128>}, {transform_indices = @transform_5, window_bounds = array<i64: 16, 128>}]} {
    %c0_i32 = arith.constant 0 : i32
    %0 = arith.cmpi eq, %arg1, %c0_i32 : i32
    %1 = arith.extui %0 : i1 to i32
    %c0_i32_0 = arith.constant 0 : i32
    %2 = arith.cmpi ne, %1, %c0_i32_0 : i32
    scf.if %2 {
      %cst_19 = arith.constant 0.000000e+00 : f32
      %33 = vector.broadcast %cst_19 : f32 to vector<16x128xf32>
      %c0_20 = arith.constant 0 : index
      %c0_21 = arith.constant 0 : index
      %34 = vector.load %arg8[%c0_20, %c0_21] : memref<16x128xf32, #tpu.memory_space<vmem>>, vector<16x128xf32>
      tpu.vector_store %arg8[%c0_20, %c0_21], %33 {strides = array<i32>} : memref<16x128xf32, #tpu.memory_space<vmem>>, vector<16x128xf32>,
    } else {
    }
    %c0 = arith.constant 0 : index
    %c0_1 = arith.constant 0 : index
    %3 = vector.load %arg2[%c0, %c0_1] : memref<16x128xf32, #tpu.memory_space<vmem>>, vector<16x128xf32>
    %c0_2 = arith.constant 0 : index
    %c0_3 = arith.constant 0 : index
    %4 = vector.load %arg3[%c0_2, %c0_3] : memref<128x512xf32, #tpu.memory_space<vmem>>, vector<128x512xf32>
    %cst = arith.constant dense<0.000000e+00> : vector<16x512xf32>
    %5 = tpu.matmul %3, %4, %cst {dimension_numbers = #tpu.dot_dimension_numbers<[1], [0], [0], [1], [0, 0, 1, 1], [], []>} : vector<16x128xf32>, vector<128x512xf32>, vector<16x512xf32> -> vector<16x512xf32>
    %c0_4 = arith.constant 0 : index
    %c0_5 = arith.constant 0 : index
    %6 = vector.load %arg4[%c0_4, %c0_5] : memref<1x512xf32, #tpu.memory_space<vmem>>, vector<1x512xf32>
    %7 = vector.broadcast %6 : vector<1x512xf32> to vector<16x512xf32>
    %8 = arith.addf %5, %7 : vector<16x512xf32>
    %9 = vector.extract_strided_slice %8 {offsets = [0, 0], sizes = [16, 256], strides = [1, 1]} : vector<16x512xf32> to vector<16x256xf32>
    %10 = vector.extract_strided_slice %8 {offsets = [0, 256], sizes = [16, 256], strides = [1, 1]} : vector<16x512xf32> to vector<16x256xf32>
    %cst_6 = arith.constant 5.000000e-01 : f32
    %11 = vector.broadcast %cst_6 : f32 to vector<16x256xf32>
    %12 = arith.mulf %11, %10 : vector<16x256xf32>
    %cst_7 = arith.constant 4.471500e-02 : f32
    %13 = vector.broadcast %cst_7 : f32 to vector<16x256xf32>
    %14 = arith.mulf %13, %10 : vector<16x256xf32>
    %15 = arith.mulf %14, %10 : vector<16x256xf32>
    %16 = arith.mulf %15, %10 : vector<16x256xf32>
    %17 = arith.addf %10, %16 : vector<16x256xf32>
    %cst_8 = arith.constant 0.797884583 : f32
    %18 = vector.broadcast %cst_8 : f32 to vector<16x256xf32>
    %19 = arith.mulf %18, %17 : vector<16x256xf32>
    %20 = math.tanh %19 : vector<16x256xf32>
    %cst_9 = arith.constant 1.000000e+00 : f32
    %21 = vector.broadcast %cst_9 : f32 to vector<16x256xf32>
    %22 = arith.addf %21, %20 : vector<16x256xf32>
    %23 = arith.mulf %12, %22 : vector<16x256xf32>
    %24 = arith.mulf %9, %23 : vector<16x256xf32>
    %c0_10 = arith.constant 0 : index
    %c0_11 = arith.constant 0 : index
    %25 = vector.load %arg8[%c0_10, %c0_11] : memref<16x128xf32, #tpu.memory_space<vmem>>, vector<16x128xf32>
    %c0_12 = arith.constant 0 : index
    %c0_13 = arith.constant 0 : index
    %26 = vector.load %arg5[%c0_12, %c0_13] : memref<256x128xf32, #tpu.memory_space<vmem>>, vector<256x128xf32>
    %cst_14 = arith.constant dense<0.000000e+00> : vector<16x128xf32>
    %27 = tpu.matmul %24, %26, %cst_14 {dimension_numbers = #tpu.dot_dimension_numbers<[1], [0], [0], [1], [0, 0, 1, 1], [], []>} : vector<16x256xf32>, vector<256x128xf32>, vector<16x128xf32> -> vector<16x128xf32>
    %28 = arith.addf %25, %27 : vector<16x128xf32>
    %c0_15 = arith.constant 0 : index
    %c0_16 = arith.constant 0 : index
    %29 = vector.load %arg8[%c0_15, %c0_16] : memref<16x128xf32, #tpu.memory_space<vmem>>, vector<16x128xf32>
    tpu.vector_store %arg8[%c0_15, %c0_16], %28 {strides = array<i32>} : memref<16x128xf32, #tpu.memory_space<vmem>>, vector<16x128xf32>,
    %c0_i32_17 = arith.constant 0 : i32
    %30 = arith.cmpi eq, %arg1, %c0_i32_17 : i32
    %31 = arith.extui %30 : i1 to i32
    %c0_i32_18 = arith.constant 0 : i32
    %32 = arith.cmpi ne, %31, %c0_i32_18 : i32
    scf.if %32 {
      %c0_19 = arith.constant 0 : index
      %c0_20 = arith.constant 0 : index
      %33 = vector.load %arg8[%c0_19, %c0_20] : memref<16x128xf32, #tpu.memory_space<vmem>>, vector<16x128xf32>
      %c0_21 = arith.constant 0 : index
      %c0_22 = arith.constant 0 : index
      %34 = vector.load %arg6[%c0_21, %c0_22] : memref<1x128xf32, #tpu.memory_space<vmem>>, vector<1x128xf32>
      %35 = vector.broadcast %34 : vector<1x128xf32> to vector<16x128xf32>
      %36 = arith.addf %33, %35 : vector<16x128xf32>
      %c0_23 = arith.constant 0 : index
      %c0_24 = arith.constant 0 : index
      %37 = vector.load %arg7[%c0_23, %c0_24] : memref<16x128xf32, #tpu.memory_space<vmem>>, vector<16x128xf32>
      tpu.vector_store %arg7[%c0_23, %c0_24], %36 {strides = array<i32>} : memref<16x128xf32, #tpu.memory_space<vmem>>, vector<16x128xf32>,
    } else {
    }
    return
  }
  func.func @transform_0(%arg0: i32, %arg1: i32) -> (i32, i32) {
    %c0_i32 = arith.constant 0 : i32
    %c0_i32_0 = arith.constant 0 : i32
    return %arg0, %c0_i32 : i32, i32
  }
  func.func @transform_1(%arg0: i32, %arg1: i32) -> (i32, i32) {
    %c0_i32 = arith.constant 0 : i32
    %c0_i32_0 = arith.constant 0 : i32
    return %c0_i32, %arg1 : i32, i32
  }
  func.func @transform_2(%arg0: i32, %arg1: i32) -> (i32, i32) {
    %c0_i32 = arith.constant 0 : i32
    %c0_i32_0 = arith.constant 0 : i32
    return %c0_i32, %arg1 : i32, i32
  }
  func.func @transform_3(%arg0: i32, %arg1: i32) -> (i32, i32) {
    %c0_i32 = arith.constant 0 : i32
    %c0_i32_0 = arith.constant 0 : i32
    return %arg1, %c0_i32 : i32, i32
  }
  func.func @transform_4(%arg0: i32, %arg1: i32) -> (i32, i32) {
    %c0_i32 = arith.constant 0 : i32
    %c0_i32_0 = arith.constant 0 : i32
    %c0_i32_1 = arith.constant 0 : i32
    return %c0_i32, %c0_i32_0 : i32, i32
  }
  func.func @transform_5(%arg0: i32, %arg1: i32) -> (i32, i32) {
    %c0_i32 = arith.constant 0 : i32
    %c0_i32_0 = arith.constant 0 : i32
    return %arg0, %c0_i32 : i32, i32
  }
}

</mosaic_0001>

<bundles_post_ra>
// kernel: tpu_custom_call.1
= control target key start
LH: loop header
LB: loop body
LE: loop exit
PB: predicated region body
PF: predicated region fallthrough
CT: control target
= control target key end

     0   :  { %10 = vsyncpa [#allocation4], 0  ;;  %s957_s0 = inlined_call_operand.hbm [shape: f32[16,128], index: 0, kind: input, shape index: {}]   ;;  %s958_s1 = inlined_call_operand.hbm [shape: f32[128,512], index: 1, kind: input, shape index: {}]   ;;  %s959_s2 = inlined_call_operand.hbm [shape: f32[1,512], index: 2, kind: input, shape index: {}]   ;;  %s960_s3 = inlined_call_operand.hbm [shape: f32[256,128], index: 3, kind: input, shape index: {}]   ;;  %s961_s4 = inlined_call_operand.hbm [shape: f32[1,128], index: 4, kind: input, shape index: {}]   ;;  %s962_s5 = inlined_call_operand.hbm [shape: f32[16,128], index: 5, kind: output, shape index: {}]  }
   0x1   :  { %11 = vsyncpa [#allocation7], 0 }
   0x2   :  { %12 = vsyncpa [#allocation10], 0 }
   0x3   :  { %13 = vsyncpa [#allocation5], 0  ;;  %s831_s18 = smov [#allocation6]   ;;  %s691_s22 = scalar_lea.hbm %s958_s1, 8192 }
   0x4   :  { %s31_s19 = sshll.u32 %s831_s18, 4  ;;  %p692_p0 = scmp.ne.s32.totalorder %s958_s1, %s691_s22  ;;  %s32_s19 = int_to_ptr.vmem [resolvable:$true] %s31_s19 }
   0x5   :  { %p695_p1 = scmp.lt.u32.totalorder %s691_s22, %s958_s1 }
   0x7   :  { %p697_p2 = pnand %p695_p1, %p692_p0 }
   0x9   :  { %700 = shalt.err (!%p697_p2)
}
   0xa   :  { %s701_s27 = scalar_lea.vmem %s32_s19, 8192  ;;  %p706_p4 = scmp.lt.s32.totalorder %s32_s19, %s32_s19 }
   0xb   :  { %p702_p3 = scmp.ne.s32.totalorder %s32_s19, %s701_s27  ;;  %p707_p5 = scmp.lt.s32.totalorder %s701_s27, %s701_s27 }
   0xd   :  { %p708_p6 = por %p707_p5, %p706_p4 }
   0xf   :  { %p709_p7 = pnand %p708_p6, %p702_p3 }
  0x11   :  { %712 = shalt.err (!%p709_p7)
}
  0x12   :  { %s832_s28 = smov 512   ;;  %s833_s29 = smov 32  }
  0x13   :  { %37 = dma.hbm_to_vmem [thread:$0]  %s958_s1, 8192, %s32_s19, [#allocation7], %s832_s28, %s832_s28, %s833_s29  }
  0x14   :  { %s834_s7 = smov [#allocation9]   ;;  %s835_s9 = smov [#allocation3]  }
  0x15   :  { %s53_s8 = sshll.u32 %s834_s7, 4  ;;  %s19_s10 = sshll.u32 %s835_s9, 4  ;;  %s54_s8 = int_to_ptr.vmem [resolvable:$true] %s53_s8  ;;  %s20_s10 = int_to_ptr.vmem [resolvable:$true] %s19_s10 }
  0x16   :  { %s713_s13 = scalar_lea.hbm %s960_s3, 4096 }
  0x17   :  { %p714_p8 = scmp.ne.s32.totalorder %s960_s3, %s713_s13  ;;  %p717_p9 = scmp.lt.u32.totalorder %s713_s13, %s960_s3 }
  0x19   :  { %p719_p10 = pnand %p717_p9, %p714_p8 }
  0x1b   :  { %722 = shalt.err (!%p719_p10)
}
  0x1c   :  { %s723_s1 = scalar_lea.vmem %s54_s8, 4096  ;;  %p728_p12 = scmp.lt.s32.totalorder %s54_s8, %s54_s8 }
  0x1d   :  { %p724_p11 = scmp.ne.s32.totalorder %s54_s8, %s723_s1  ;;  %p729_p13 = scmp.lt.s32.totalorder %s723_s1, %s723_s1 }
  0x1f   :  { %p730_p0 = por %p729_p13, %p728_p12 }
  0x21   :  { %p731_p1 = pnand %p730_p0, %p724_p11 }
  0x23   :  { %734 = shalt.err (!%p731_p1)
}
  0x24   :  { %s836_s18 = smov 128   ;;  %s837_s19 = smov 8  }
  0x25   :  { %59 = dma.hbm_to_vmem [thread:$0]  %s960_s3, 4096, %s54_s8, [#allocation10], %s836_s18, %s836_s18, %s837_s19  }
  0x26   :  { %s735_s24 = scalar_lea.hbm %s957_s0, 256 }
  0x27   :  { %p736_p2 = scmp.ne.s32.totalorder %s957_s0, %s735_s24  ;;  %p739_p3 = scmp.lt.u32.totalorder %s735_s24, %s957_s0 }
  0x29   :  { %p741_p4 = pnand %p739_p3, %p736_p2 }
  0x2b   :  { %744 = shalt.err (!%p741_p4)
}
  0x2c   :  { %s745_s29 = scalar_lea.vmem %s20_s10, 256  ;;  %p750_p6 = scmp.lt.s32.totalorder %s20_s10, %s20_s10 }
  0x2d   :  { %p746_p5 = scmp.ne.s32.totalorder %s20_s10, %s745_s29  ;;  %p751_p7 = scmp.lt.s32.totalorder %s745_s29, %s745_s29 }
  0x2f   :  { %p752_p8 = por %p751_p7, %p750_p6 }
  0x31   :  { %p753_p9 = pnand %p752_p8, %p746_p5 }
  0x33   :  { %756 = shalt.err (!%p753_p9)
}
  0x34   :  { %25 = dma.hbm_to_vmem [thread:$0]  %s957_s0, 256, %s20_s10, [#allocation4], %s836_s18, %s836_s18, %s837_s19  }
  0x35   :  { %s838_s6 = smov [#allocation8]   ;;  %s839_s8 = smov [#allocation11]  }
  0x36   :  { %s44_s7 = sshll.u32 %s838_s6, 4  ;;  %s66_s9 = sshll.u32 %s839_s8, 4  ;;  %s45_s7 = int_to_ptr.vmem [resolvable:$true] %s44_s7  ;;  %s67_s9 = int_to_ptr.vmem [resolvable:$true] %s66_s9 }
  0x37   :  { %s757_s13 = scalar_lea.hbm %s959_s2, 64 }
  0x38   :  { %p758_p10 = scmp.ne.s32.totalorder %s959_s2, %s757_s13  ;;  %p761_p11 = scmp.lt.u32.totalorder %s757_s13, %s959_s2 }
  0x3a   :  { %p763_p12 = pnand %p761_p11, %p758_p10 }
  0x3c   :  { %766 = shalt.err (!%p763_p12)
}
  0x3d   :  { %s767_s0 = scalar_lea.vmem %s45_s7, 64  ;;  %p772_p0 = scmp.lt.s32.totalorder %s45_s7, %s45_s7 }
  0x3e   :  { %p768_p13 = scmp.ne.s32.totalorder %s45_s7, %s767_s0  ;;  %p773_p1 = scmp.lt.s32.totalorder %s767_s0, %s767_s0 }
  0x40   :  { %p774_p2 = por %p773_p1, %p772_p0 }
  0x42   :  { %p775_p3 = pnand %p774_p2, %p768_p13 }
  0x44   :  { %778 = shalt.err (!%p775_p3)
}
  0x45   :  { %47 = dma.hbm_to_vmem [thread:$0]  %s959_s2, 64, %s45_s7, [#allocation7]  }
  0x46   :  { %s779_s22 = scalar_lea.hbm %s961_s4, 16 }
  0x47   :  { %p780_p4 = scmp.ne.s32.totalorder %s961_s4, %s779_s22  ;;  %p783_p5 = scmp.lt.u32.totalorder %s779_s22, %s961_s4 }
  0x49   :  { %p785_p6 = pnand %p783_p5, %p780_p4 }
  0x4b   :  { %788 = shalt.err (!%p785_p6)
}
  0x4c   :  { %s789_s27 = scalar_lea.vmem %s67_s9, 16  ;;  %s793_s28 = scalar_lea.vmem %s67_s9, 32 }
  0x4d   :  { %p790_p7 = scmp.ne.s32.totalorder %s67_s9, %s789_s27  ;;  %p794_p8 = scmp.lt.s32.totalorder %s67_s9, %s67_s9 }
  0x4e   :  { %p795_p9 = scmp.lt.s32.totalorder %s793_s28, %s789_s27 }
  0x50   :  { %p796_p10 = por %p795_p9, %p794_p8 }
  0x52   :  { %p797_p11 = pnand %p796_p10, %p790_p7 }
  0x54   :  { %800 = shalt.err (!%p797_p11)
}
  0x55   :  { %69 = dma.hbm_to_vmem [thread:$0]  %s961_s4, 16, %s67_s9, [#allocation10]  }
  0x56   :  { %823 = dma.done.wait [#allocation4], 256  }
  0x57   :  { %824 = vsyncadd [#allocation4], 4294967040 }
  0x58   :  { %825 = dma.done.wait [#allocation7], 8256  }
  0x59   :  { %826 = vsyncadd [#allocation7], 4294959040 }
  0x5a   :  { %827 = dma.done.wait [#allocation10], 4112  }
  0x5b   :  { %828 = vsyncadd [#allocation10], 4294963184  ;;  %v840_v0 = vmov 0.0   ;;  %v96_v1 = vld [vmem:[#allocation6 + $0x18] sm:$0xff]  ;;  %v95_v3 = vld [vmem:[#allocation6 + $0x10] sm:$0xff]  ;;  %s841_s4 = smov [#allocation12]  }
  0x5c   :  { %320 = vmatprep.mubr.f32.mxu1 %v840_v0  ;;  %243 = vmatprep.mubr.f32.mxu0 %v840_v0  ;;  %v100_v2 = vld [vmem:[#allocation6 + $0x38] sm:$0xff]  ;;  %v99_v5 = vld [vmem:[#allocation6 + $0x30] sm:$0xff]  ;;  %v94_v22 = vld [vmem:[#allocation6 + $0x8] sm:$0xff]  ;;  %s507_s3 = sshll.u32 %s841_s4, 4  ;;  %s508_s3 = int_to_ptr.vmem [resolvable:$true] %s507_s3 }
  0x5d   :  { %v592_v4 = vpack.c.bf16 %v100_v2, %v96_v1  ;;  %v104_v6 = vld [vmem:[#allocation6 + $0x58] sm:$0xff]  ;;  %v594_v8 = vpack.c.bf16 %v99_v5, %v95_v3  ;;  %v103_v10 = vld [vmem:[#allocation6 + $0x50] sm:$0xff]  ;;  %v98_v23 = vld [vmem:[#allocation6 + $0x28] sm:$0xff]  ;;  %s801_s30 = scalar_lea.vmem %s508_s3, 256  ;;  %p806_p13 = scmp.lt.s32.totalorder %s508_s3, %s508_s3 }
  0x5e   :  { %v108_v7 = vld [vmem:[#allocation6 + $0x78] sm:$0xff]  ;;  %v107_v11 = vld [vmem:[#allocation6 + $0x70] sm:$0xff]  ;;  %v560_v26 = vpack.c.bf16 %v98_v23, %v94_v22  ;;  %v93_v27 = vld [vmem:[#allocation6] sm:$0xff]  ;;  %p802_p12 = scmp.ne.s32.totalorder %s508_s3, %s801_s30  ;;  %p807_p0 = scmp.lt.s32.totalorder %s801_s30, %s801_s30 }
  0x5f   :  { %v596_v9 = vpack.c.bf16 %v108_v7, %v104_v6  ;;  %v112_v12 = vld [vmem:[#allocation6 + $0x98] sm:$0xff]  ;;  %593 = vmatprep.subr.bf16.mxu1 %v592_v4  ;;  %v598_v14 = vpack.c.bf16 %v107_v11, %v103_v10  ;;  %v111_v16 = vld [vmem:[#allocation6 + $0x90] sm:$0xff]  ;;  %v97_v28 = vld [vmem:[#allocation6 + $0x20] sm:$0xff] }
  0x60   :  { %v116_v13 = vld [vmem:[#allocation6 + $0xb8] sm:$0xff]  ;;  %595 = vmatpush1.bf16.msra.mxu1 %v594_v8  ;;  %v115_v17 = vld [vmem:[#allocation6 + $0xb0] sm:$0xff]  ;;  %v562_v31 = vpack.c.bf16 %v97_v28, %v93_v27  ;;  %v102_v32 = vld [vmem:[#allocation6 + $0x48] sm:$0xff]  ;;  %561 = vmatprep.subr.bf16.mxu0 %v560_v26  ;;  %p808_p1 = por %p807_p0, %p806_p13 }
  0x61   :  { %597 = vmatprep.subr.bf16.mxu1 %v596_v9  ;;  %v600_v15 = vpack.c.bf16 %v116_v13, %v112_v12  ;;  %v120_v18 = vld [vmem:[#allocation6 + $0xd8] sm:$0xff]  ;;  %v602_v20 = vpack.c.bf16 %v115_v17, %v111_v16  ;;  %v119_v21 = vld [vmem:[#allocation6 + $0xd0] sm:$0xff]  ;;  %v106_v34 = vld [vmem:[#allocation6 + $0x68] sm:$0xff] }
  0x62   :  { %v124_v19 = vld [vmem:[#allocation6 + $0xf8] sm:$0xff]  ;;  %v123_v25 = vld [vmem:[#allocation6 + $0xf0] sm:$0xff]  ;;  %563 = vmatpush1.bf16.msra.mxu0 %v562_v31  ;;  %v564_v37 = vpack.c.bf16 %v106_v34, %v102_v32  ;;  %v101_v38 = vld [vmem:[#allocation6 + $0x40] sm:$0xff]  ;;  %p809_p2 = pnand %p808_p1, %p802_p12 }
  0x63   :  { %v604_v24 = vpack.c.bf16 %v124_v19, %v120_v18  ;;  %v128_v29 = vld [vmem:[#allocation6 + $0x118] sm:$0xff]  ;;  %v127_v33 = vld [vmem:[#allocation6 + $0x110] sm:$0xff]  ;;  %v606_v35 = vpack.c.bf16 %v123_v25, %v119_v21  ;;  %v105_v39 = vld [vmem:[#allocation6 + $0x60] sm:$0xff] }
  0x64   :  { %599 = vmatpush1.bf16.msra.mxu1 %v598_v14  ;;  %v132_v30 = vld [vmem:[#allocation6 + $0x138] sm:$0xff]  ;;  %v131_v36 = vld [vmem:[#allocation6 + $0x130] sm:$0xff]  ;;  %v566_v42 = vpack.c.bf16 %v105_v39, %v101_v38  ;;  %v110_v43 = vld [vmem:[#allocation6 + $0x88] sm:$0xff]  ;;  %565 = vmatprep.subr.bf16.mxu0 %v564_v37 }
  0x65   :  { %601 = vmatprep.subr.bf16.mxu1 %v600_v15  ;;  %v608_v40 = vpack.c.bf16 %v132_v30, %v128_v29  ;;  %v136_v41 = vld [vmem:[#allocation6 + $0x158] sm:$0xff]  ;;  %v114_v44 = vld [vmem:[#allocation6 + $0xa8] sm:$0xff]  ;;  %v109_v47 = vld [vmem:[#allocation6 + $0x80] sm:$0xff]  ;;  %v610_v51 = vpack.c.bf16 %v131_v36, %v127_v33 }
  0x66   :  { %v140_v45 = vld [vmem:[#allocation6 + $0x178] sm:$0xff]  ;;  %v568_v46 = vpack.c.bf16 %v114_v44, %v110_v43  ;;  %v113_v48 = vld [vmem:[#allocation6 + $0xa0] sm:$0xff]  ;;  %v118_v49 = vld [vmem:[#allocation6 + $0xc8] sm:$0xff]  ;;  %567 = vmatpush1.bf16.msra.mxu0 %v566_v42 }
  0x67   :  { %v122_v50 = vld [vmem:[#allocation6 + $0xe8] sm:$0xff]  ;;  %v135_v52 = vld [vmem:[#allocation6 + $0x150] sm:$0xff]  ;;  %v570_v54 = vpack.c.bf16 %v113_v48, %v109_v47  ;;  %v612_v55 = vpack.c.bf16 %v140_v45, %v136_v41  ;;  %v144_v56 = vld [vmem:[#allocation6 + $0x198] sm:$0xff] }
  0x68   :  { %603 = vmatpush1.bf16.msra.mxu1 %v602_v20  ;;  %v139_v53 = vld [vmem:[#allocation6 + $0x170] sm:$0xff]  ;;  %569 = vmatprep.subr.bf16.mxu0 %v568_v46  ;;  %v572_v57 = vpack.c.bf16 %v122_v50, %v118_v49  ;;  %v117_v58 = vld [vmem:[#allocation6 + $0xc0] sm:$0xff]  ;;  %v148_v60 = vld [vmem:[#allocation6 + $0x1b8] sm:$0xff] }
  0x69   :  { %605 = vmatprep.subr.bf16.mxu1 %v604_v24  ;;  %v121_v59 = vld [vmem:[#allocation6 + $0xe0] sm:$0xff]  ;;  %v126_v61 = vld [vmem:[#allocation6 + $0x108] sm:$0xff]  ;;  %v614_v63 = vpack.c.bf16 %v139_v53, %v135_v52  ;;  %v143_v1 = vld [vmem:[#allocation6 + $0x190] sm:$0xff]  ;;  %v616_v4 = vpack.c.bf16 %v148_v60, %v144_v56 }
  0x6a   :  { %v130_v62 = vld [vmem:[#allocation6 + $0x128] sm:$0xff]  ;;  %v147_v2 = vld [vmem:[#allocation6 + $0x1b0] sm:$0xff]  ;;  %571 = vmatpush1.bf16.msra.mxu0 %v570_v54  ;;  %v574_v3 = vpack.c.bf16 %v121_v59, %v117_v58  ;;  %v152_v5 = vld [vmem:[#allocation6 + $0x1d8] sm:$0xff] }
  0x6b   :  { %573 = vmatprep.subr.bf16.mxu0 %v572_v57  ;;  %v576_v6 = vpack.c.bf16 %v130_v62, %v126_v61  ;;  %v125_v7 = vld [vmem:[#allocation6 + $0x100] sm:$0xff]  ;;  %v156_v9 = vld [vmem:[#allocation6 + $0x1f8] sm:$0xff]  ;;  %v134_v10 = vld [vmem:[#allocation6 + $0x148] sm:$0xff]  ;;  %v618_v12 = vpack.c.bf16 %v147_v2, %v143_v1 }
  0x6c   :  { %607 = vmatpush1.bf16.msra.mxu1 %v606_v35  ;;  %v129_v8 = vld [vmem:[#allocation6 + $0x120] sm:$0xff]  ;;  %v138_v11 = vld [vmem:[#allocation6 + $0x168] sm:$0xff]  ;;  %v151_v13 = vld [vmem:[#allocation6 + $0x1d0] sm:$0xff]  ;;  %v620_v15 = vpack.c.bf16 %v156_v9, %v152_v5 }
  0x6d   :  { %609 = vmatprep.subr.bf16.mxu1 %v608_v40  ;;  %v578_v14 = vpack.c.bf16 %v129_v8, %v125_v7  ;;  %v155_v16 = vld [vmem:[#allocation6 + $0x1f0] sm:$0xff]  ;;  %v580_v17 = vpack.c.bf16 %v138_v11, %v134_v10  ;;  %v133_v18 = vld [vmem:[#allocation6 + $0x140] sm:$0xff]  ;;  %v142_v20 = vld [vmem:[#allocation6 + $0x188] sm:$0xff] }
  0x6e   :  { %575 = vmatpush1.bf16.msra.mxu0 %v574_v3  ;;  %v137_v19 = vld [vmem:[#allocation6 + $0x160] sm:$0xff]  ;;  %v146_v21 = vld [vmem:[#allocation6 + $0x1a8] sm:$0xff]  ;;  %v622_v22 = vpack.c.bf16 %v155_v16, %v151_v13  ;;  %v91_v29 = vld [vmem:[#allocation3] sm:$0xff] }
  0x6f   :  { %577 = vmatprep.subr.bf16.mxu0 %v576_v6  ;;  %v582_v23 = vpack.c.bf16 %v137_v19, %v133_v18  ;;  %v584_v24 = vpack.c.bf16 %v146_v21, %v142_v20  ;;  %v141_v25 = vld [vmem:[#allocation6 + $0x180] sm:$0xff]  ;;  %v150_v27 = vld [vmem:[#allocation6 + $0x1c8] sm:$0xff]  ;;  %v92_v34 = vld [vmem:[#allocation3 + $0x8] sm:$0xff]  ;;  %v159_v20 = vlaneseq }
  0x70   :  { %611 = vmatpush1.bf16.msra.mxu1 %v610_v51  ;;  %v145_v26 = vld [vmem:[#allocation6 + $0x1a0] sm:$0xff]  ;;  %v154_v28 = vld [vmem:[#allocation6 + $0x1e8] sm:$0xff]  ;;  %v393_v42 = vld [vmem:[#allocation9 + $0x90] sm:$0xff] }
  0x71   :  { %613 = vmatprep.subr.bf16.mxu1 %v612_v55  ;;  %v586_v30 = vpack.c.bf16 %v145_v26, %v141_v25  ;;  %v588_v31 = vpack.c.bf16 %v154_v28, %v150_v27  ;;  %v149_v32 = vld [vmem:[#allocation6 + $0x1c0] sm:$0xff]  ;;  %v392_v37 = vld [vmem:[#allocation9 + $0x88] sm:$0xff]  ;;  %v377_v45 = vld [vmem:[#allocation9 + $0x10] sm:$0xff]  ;;  %v160_v21 = vshrl.u32 %v159_v20, 7 }
  0x72   :  { %579 = vmatpush1.bf16.msra.mxu0 %v578_v14  ;;  %v153_v33 = vld [vmem:[#allocation6 + $0x1e0] sm:$0xff]  ;;  %v376_v40 = vld [vmem:[#allocation9 + $0x8] sm:$0xff]  ;;  %v397_v53 = vld [vmem:[#allocation9 + $0xb0] sm:$0xff] }
  0x73   :  { %581 = vmatprep.subr.bf16.mxu0 %v580_v17  ;;  %v590_v35 = vpack.c.bf16 %v153_v33, %v149_v32  ;;  %v391_v36 = vld [vmem:[#allocation9 + $0x80] sm:$0xff]  ;;  %v394_v43 = vld [vmem:[#allocation9 + $0x98] sm:$0xff]  ;;  %v396_v48 = vld [vmem:[#allocation9 + $0xa8] sm:$0xff] }
  0x74   :  { %615 = vmatpush1.bf16.msra.mxu1 %v614_v63  ;;  %v624_v38 = vpack.c.bf16 %v392_v37, %v391_v36  ;;  %v375_v39 = vld [vmem:[#allocation9] sm:$0xff]  ;;  %v628_v44 = vpack.c.bf16 %v394_v43, %v393_v42  ;;  %v378_v46 = vld [vmem:[#allocation9 + $0x18] sm:$0xff]  ;;  %v380_v51 = vld [vmem:[#allocation9 + $0x28] sm:$0xff] }
  0x75   :  { %617 = vmatprep.subr.bf16.mxu1 %v616_v4  ;;  %v626_v41 = vpack.c.bf16 %v376_v40, %v375_v39  ;;  %v630_v47 = vpack.c.bf16 %v378_v46, %v377_v45  ;;  %v379_v50 = vld [vmem:[#allocation9 + $0x20] sm:$0xff]  ;;  %v398_v54 = vld [vmem:[#allocation9 + $0xb8] sm:$0xff]  ;;  %v381_v56 = vld [vmem:[#allocation9 + $0x30] sm:$0xff] }
  0x76   :  { %583 = vmatpush1.bf16.msra.mxu0 %v582_v23  ;;  %v634_v52 = vpack.c.bf16 %v380_v51, %v379_v50  ;;  %v636_v55 = vpack.c.bf16 %v398_v54, %v397_v53  ;;  %v382_v57 = vld [vmem:[#allocation9 + $0x38] sm:$0xff]  ;;  %v399_v58 = vld [vmem:[#allocation9 + $0xc0] sm:$0xff]  ;;  %v400_v60 = vld [vmem:[#allocation9 + $0xc8] sm:$0xff] }
  0x77   :  { %585 = vmatprep.subr.bf16.mxu0 %v584_v24  ;;  %v638_v59 = vpack.c.bf16 %v382_v57, %v381_v56  ;;  %v383_v61 = vld [vmem:[#allocation9 + $0x40] sm:$0xff]  ;;  %v384_v62 = vld [vmem:[#allocation9 + $0x48] sm:$0xff]  ;;  %v640_v63 = vpack.c.bf16 %v400_v60, %v399_v58  ;;  %v401_v1 = vld [vmem:[#allocation9 + $0xd0] sm:$0xff]  ;;  %v173_v24 = vsub.s32 3, %v160_v21  ;;  %v161_v57 = vsub.s32 0, %v160_v21 }
  0x78   :  { %619 = vmatpush1.bf16.msra.mxu1 %v618_v12  ;;  %v402_v2 = vld [vmem:[#allocation9 + $0xd8] sm:$0xff]  ;;  %v642_v3 = vpack.c.bf16 %v384_v62, %v383_v61  ;;  %v385_v5 = vld [vmem:[#allocation9 + $0x50] sm:$0xff]  ;;  %v403_v8 = vld [vmem:[#allocation9 + $0xe0] sm:$0xff] }
  0x79   :  { %621 = vmatprep.subr.bf16.mxu1 %v620_v15  ;;  %v644_v4 = vpack.c.bf16 %v402_v2, %v401_v1  ;;  %v386_v6 = vld [vmem:[#allocation9 + $0x58] sm:$0xff]  ;;  %v404_v9 = vld [vmem:[#allocation9 + $0xe8] sm:$0xff]  ;;  %v387_v11 = vld [vmem:[#allocation9 + $0x60] sm:$0xff] }
  0x7a   :  { %587 = vmatpush1.bf16.msra.mxu0 %v586_v30  ;;  %v646_v7 = vpack.c.bf16 %v386_v6, %v385_v5  ;;  %v648_v10 = vpack.c.bf16 %v404_v9, %v403_v8  ;;  %v388_v12 = vld [vmem:[#allocation9 + $0x68] sm:$0xff]  ;;  %v405_v14 = vld [vmem:[#allocation9 + $0xf0] sm:$0xff]  ;;  %v406_v15 = vld [vmem:[#allocation9 + $0xf8] sm:$0xff] }
  0x7b   :  { %589 = vmatprep.subr.bf16.mxu0 %v588_v31  ;;  %v650_v13 = vpack.c.bf16 %v388_v12, %v387_v11  ;;  %v652_v16 = vpack.c.bf16 %v406_v15, %v405_v14  ;;  %v389_v17 = vld [vmem:[#allocation9 + $0x70] sm:$0xff]  ;;  %v390_v18 = vld [vmem:[#allocation9 + $0x78] sm:$0xff] }
  0x7c   :  { %623 = vmatpush1.bf16.msra.mxu1 %v622_v22  ;;  %v654_v19 = vpack.c.bf16 %v390_v18, %v389_v17  ;;  %v169_v22 = vsub.s32 2, %v160_v21  ;;  %v157_v23 = vld [vmem:[#allocation8] sm:$0xf] }
  0x7d   :  { %656 = vmatprep.subr.bf16.mxu1 %v624_v38  ;;  %v174_v26 = vrot.slane %v157_v23, %v173_v24  ;;  %v162_v60 = vrot.slane %v157_v23, %v161_v57 }
  0x7e   :  { %591 = vmatpush1.bf16.msra.mxu0 %v590_v35  ;;  %v170_v25 = vrot.slane %v157_v23, %v169_v22 }
  0x7f   :  { %321 = vmatmul.mubr.f32.vlgmr.msra.gmra.mrb[0].mxu1 %v91_v29  ;;  %625 = vmatprep.subr.bf16.mxu0 %v624_v38 }
  0x80   :  { %326 = vmatprep.mubr.f32.mxu1 %v840_v0  ;;  %664 = vmatpush3.bf16.msra.mxu1 %v626_v41 }
  0x81   :  { %244 = vmatmul.mubr.f32.vlgmr.msra.gmra.mrb[0].mxu0 %v91_v29  ;;  %657 = vmatprep.subr.bf16.mxu1 %v628_v44 }
  0x82   :  { %249 = vmatprep.mubr.f32.mxu0 %v840_v0  ;;  %627 = vmatpush3.bf16.msra.mxu0 %v626_v41  ;;  %v395_v0 = vld [vmem:[#allocation9 + $0xa0] sm:$0xff] }
  0x83   :  { %327 = vmatmul.mubr.f32.gmra.mrb[2].mxu1 %v92_v34  ;;  %629 = vmatprep.subr.bf16.mxu0 %v628_v44  ;;  %v632_v49 = vpack.c.bf16 %v396_v48, %v395_v0 }
  0x84   :  { %665 = vmatpush3.bf16.msra.mxu1 %v630_v47 }
  0x85   :  { %250 = vmatmul.mubr.f32.gmra.mrb[2].mxu0 %v92_v34  ;;  %658 = vmatprep.subr.bf16.mxu1 %v632_v49 }
  0x86   :  { %631 = vmatpush3.bf16.msra.mxu0 %v630_v47 }
  0x87   :  { %633 = vmatprep.subr.bf16.mxu0 %v632_v49 }
  0x88   :  { %666 = vmatpush3.bf16.msra.mxu1 %v634_v52 }
  0x89   :  { %659 = vmatprep.subr.bf16.mxu1 %v636_v55 }
  0x8a   :  { %635 = vmatpush3.bf16.msra.mxu0 %v634_v52 }
  0x8b   :  { %637 = vmatprep.subr.bf16.mxu0 %v636_v55 }
  0x8c   :  { %667 = vmatpush3.bf16.msra.mxu1 %v638_v59 }
  0x8d   :  { %660 = vmatprep.subr.bf16.mxu1 %v640_v63 }
  0x8e   :  { %639 = vmatpush3.bf16.msra.mxu0 %v638_v59  ;;  %v165_v59 = vsub.s32 1, %v160_v21 }
  0x8f   :  { %641 = vmatprep.subr.bf16.mxu0 %v640_v63 }
  0x90   :  { %668 = vmatpush3.bf16.msra.mxu1 %v642_v3  ;;  %v166_v61 = vrot.slane %v157_v23, %v165_v59 }
  0x91   :  { %661 = vmatprep.subr.bf16.mxu1 %v644_v4 }
  0x92   :  { %643 = vmatpush3.bf16.msra.mxu0 %v642_v3 }
  0x93   :  { %645 = vmatprep.subr.bf16.mxu0 %v644_v4 }
  0x94   :  { %669 = vmatpush3.bf16.msra.mxu1 %v646_v7 }
  0x95   :  { %662 = vmatprep.subr.bf16.mxu1 %v648_v10 }
  0x96   :  { %647 = vmatpush3.bf16.msra.mxu0 %v646_v7 }
  0x97   :  { %649 = vmatprep.subr.bf16.mxu0 %v648_v10 }
  0x98   :  { %670 = vmatpush3.bf16.msra.mxu1 %v650_v13 }
  0x99   :  { %663 = vmatprep.subr.bf16.mxu1 %v652_v16 }
  0x9a   :  { %651 = vmatpush3.bf16.msra.mxu0 %v650_v13 }
  0x9b   :  { %653 = vmatprep.subr.bf16.mxu0 %v652_v16 }
  0x9c   :  { %671 = vmatpush3.bf16.msra.mxu1 %v654_v19 }
  0x9e   :  { %655 = vmatpush3.bf16.msra.mxu0 %v654_v19 }
 0x152   :  { %v322_v27 = vpop.f32.mrb[0].mxu1 }
 0x153   :  { %v323_v28 = vadd.f32 %v322_v27, %v170_v25  ;;  %v324_v29 = vpop.f32.mrb[1].mxu1 }
 0x154   :  { %v325_v30 = vadd.f32 %v324_v29, %v174_v26  ;;  %v245_v42 = vpop.f32.mrb[0].mxu0 }
 0x155   :  { %v337_v31 = vmul.f32 0.044715, %v323_v28  ;;  %v247_v46 = vpop.f32.mrb[1].mxu0  ;;  %v246_v1 = vadd.f32 %v245_v42, %v162_v60  ;;  %v333_v2 = vmul.f32 0.5, %v323_v28 }
 0x156   :  { %v338_v32 = vmul.f32 0.044715, %v325_v30  ;;  %v328_v33 = vpop.f32.mrb[2].mxu1  ;;  %v248_v4 = vadd.f32 %v247_v46, %v166_v61  ;;  %v334_v5 = vmul.f32 0.5, %v325_v30 }
 0x157   :  { %v341_v34 = vmul.f32 %v337_v31, %v323_v28  ;;  %v329_v35 = vadd.f32 %v328_v33, %v170_v25  ;;  %v330_v36 = vpop.f32.mrb[3].mxu1  ;;  %v521_v25 = vld [vmem:[#allocation11] ss:$0 sm:$0xff] }
 0x158   :  { %v342_v37 = vmul.f32 %v338_v32, %v325_v30  ;;  %v331_v38 = vadd.f32 %v330_v36, %v174_v26  ;;  %v251_v51 = vpop.f32.mrb[2].mxu0 }
 0x159   :  { %v339_v39 = vmul.f32 0.044715, %v329_v35  ;;  %v345_v40 = vmul.f32 %v341_v34, %v323_v28  ;;  %v253_v54 = vpop.f32.mrb[3].mxu0  ;;  %v252_v12 = vadd.f32 %v251_v51, %v162_v60  ;;  %v335_v13 = vmul.f32 0.5, %v329_v35 }
 0x15a   :  { %v340_v41 = vmul.f32 0.044715, %v331_v38  ;;  %v346_v43 = vmul.f32 %v342_v37, %v325_v30  ;;  %v254_v16 = vadd.f32 %v253_v54, %v166_v61  ;;  %v336_v17 = vmul.f32 0.5, %v331_v38 }
 0x15b   :  { %v343_v44 = vmul.f32 %v339_v39, %v329_v35  ;;  %v349_v45 = vadd.f32 %v345_v40, %v323_v28 }
 0x15c   :  { %v344_v47 = vmul.f32 %v340_v41, %v331_v38  ;;  %v350_v0 = vadd.f32 %v346_v43, %v325_v30 }
 0x15d   :  { %v353_v48 = vmul.f32 0.7978846, %v349_v45  ;;  %v347_v49 = vmul.f32 %v343_v44, %v329_v35 }
 0x15e   :  { %v354_v50 = vmul.f32 0.7978846, %v350_v0  ;;  %v348_v52 = vmul.f32 %v344_v47, %v331_v38 }
 0x15f   :  { %683 = vtanh.f32 %v353_v48  ;;  %v351_v53 = vadd.f32 %v347_v49, %v329_v35 }
 0x160   :  { %685 = vtanh.f32 %v354_v50  ;;  %v352_v55 = vadd.f32 %v348_v52, %v331_v38 }
 0x161   :  { %v355_v56 = vmul.f32 0.7978846, %v351_v53 }
 0x162   :  { %v356_v58 = vmul.f32 0.7978846, %v352_v55 }
 0x163   :  { %687 = vtanh.f32 %v355_v56 }
 0x164   :  { %689 = vtanh.f32 %v356_v58 }
 0x169   :  { %v684_v62 = vpop.eup %683 }
 0x16a   :  { %v686_v63 = vpop.eup %685  ;;  %v361_v3 = vadd.f32 1.0, %v684_v62 }
 0x16b   :  { %v362_v6 = vadd.f32 1.0, %v686_v63 }
 0x16c   :  { %v365_v7 = vmul.f32 %v361_v3, %v333_v2 }
 0x16d   :  { %v688_v8 = vpop.eup %687  ;;  %v366_v9 = vmul.f32 %v362_v6, %v334_v5 }
 0x16e   :  { %v690_v10 = vpop.eup %689  ;;  %v369_v11 = vmul.f32 %v365_v7, %v246_v1  ;;  %v363_v14 = vadd.f32 1.0, %v688_v8 }
 0x16f   :  { %v370_v15 = vmul.f32 %v366_v9, %v248_v4  ;;  %v364_v18 = vadd.f32 1.0, %v690_v10 }
 0x170   :  { %v367_v19 = vmul.f32 %v363_v14, %v335_v13 }
 0x171   :  { %v368_v20 = vmul.f32 %v364_v18, %v336_v17  ;;  %471 = vmatprep.mubr.f32.mxu0 %v370_v15 }
 0x172   :  { %v371_v21 = vmul.f32 %v367_v19, %v252_v12  ;;  %472 = vmatmul.mubr.f32.vlgmr.msra.gmra.mrb[4].mxu0 %v369_v11 }
 0x173   :  { %v372_v22 = vmul.f32 %v368_v20, %v254_v16 }
 0x175   :  { %476 = vmatprep.mubr.f32.mxu1 %v372_v22 }
 0x176   :  { %477 = vmatmul.mubr.f32.vlgmr.msra.gmra.mrb[4].mxu1 %v371_v21 }
 0x245   :  { %v554_v23 = vpop.f32.mrb[4].mxu0 }
 0x246   :  { %v555_v24 = vpop.f32.mrb[5].mxu0 }
 0x247   :  { %v556_v26 = vadd.f32 %v555_v24, %v554_v23 }
 0x249   :  { %v498_v27 = vadd.f32 %v556_v26, %v521_v25  ;;  %v557_v28 = vpop.f32.mrb[4].mxu1 }
 0x24a   :  { %v558_v29 = vpop.f32.mrb[5].mxu1 }
 0x24b   :  { %500 = vst [vmem:[#allocation12] sm:$0xff] %v498_v27  ;;  %v559_v30 = vadd.f32 %v558_v29, %v557_v28 }
 0x24d   :  { %v499_v31 = vadd.f32 %v559_v30, %v521_v25 }
 0x24f   :  { %501 = vst [vmem:[#allocation12 + $0x8] sm:$0xff] %v499_v31 }
 0x250   :  { %812 = shalt.err (!%p809_p2)
}
 0x251   :  { %s813_s8 = scalar_lea.hbm %s962_s5, 256 }
 0x252   :  { %p814_p3 = scmp.ne.s32.totalorder %s962_s5, %s813_s8  ;;  %p817_p4 = scmp.lt.u32.totalorder %s813_s8, %s962_s5 }
 0x254   :  { %p819_p5 = pnand %p817_p4, %p814_p3 }
 0x256   :  { %822 = shalt.err (!%p819_p5)
}
 0x257   :  { %513 = dma.vmem_to_hbm [thread:$0]  %s508_s3, 256, %s962_s5, [#allocation5], %s836_s18, %s836_s18, %s837_s19  }
 0x258   :  { %829 = dma.done.wait [#allocation5], 256  }
 0x259   :  { %830 = vsyncadd [#allocation5], 4294967040 }
 0x25a   :  { %517 = vsyncpa [#allocation4], 1 }
 0x25b   :  { %518 = vsyncpa [#allocation7], 1 }
 0x25c   :  { %519 = vsyncpa [#allocation10], 1 }
 0x25d   :  { %520 = vsyncpa [#allocation5], 1 }

</bundles_post_ra>
